<compile_context>
chip_gen: v7x
topology: tpu7x:2x2x1
jax: 0.10.0
libtpu: 0.0.40
codegen_flags: <defaults>
</compile_context>

<pallas_src>
import jax
import jax.numpy as jnp
from jax.experimental import pallas as pl
from jax.experimental.pallas import tpu as pltpu

_EPS = 1e-8


def _make_ac_kernel(w_len: bool, w_area: bool):
    """Kernel factory, statically specialized on which loss terms are live."""

    def kernel(pred_ref, target_ref, out_ref, *scratch):
        scratch = list(scratch)
        acc_reg = scratch.pop(0)                      # (H, W)      f32
        acc_len = scratch.pop(0) if w_len else None   # (H-2, W-2)  f32
        acc_area = scratch.pop(0) if w_area else None  # (H, W)     f32

        i = pl.program_id(1)          # inner ("arbitrary") step within a core
        nsteps = pl.num_programs(1)

        @pl.when(i == 0)
        def _init():
            acc_reg[...] = jnp.zeros_like(acc_reg)
            if w_len:
                acc_len[...] = jnp.zeros_like(acc_len)
            if w_area:
                acc_area[...] = jnp.zeros_like(acc_area)

        p = pred_ref[...].astype(jnp.float32)     # (TB, H, W)
        t = target_ref[...].astype(jnp.float32)   # (TB, H, W)

        # ---- fused region term: p*(t-1)^2 + (1-p)*t^2 == t^2 + p*(1-2t) ----
        region = t * t + p * (1.0 - 2.0 * t)
        # Reduction over the leading (non-tiled) axis is plain vreg adds (VPU).
        acc_reg[...] += jnp.sum(region, axis=0)

        if w_area:
            acc_area[...] += jnp.sum(p, axis=0)

        if w_len:
            # ---- length (contour) term, cropped exactly like the torch code:
            # delta[i, j] = (p[i+2, j] - p[i+1, j])^2 + (p[i, j+2] - p[i, j+1])^2
            dr_p = p[:, 2:, :-2] - p[:, 1:-1, :-2]
            dc_p = p[:, :-2, 2:] - p[:, :-2, 1:-1]
            a = dr_p * dr_p + dc_p * dc_p + _EPS      # (TB, H-2, W-2)

            dr_t = t[:, 2:, :-2] - t[:, 1:-1, :-2]
            dc_t = t[:, :-2, 2:] - t[:, :-2, 1:-1]
            b = dr_t * dr_t + dc_t * dc_t + _EPS      # (TB, H-2, W-2)

            # (sqrt(a) - sqrt(b))^2 == a + b - 2*sqrt(a*b): one sqrt (EUP slot).
            len_sq = a + b - 2.0 * jnp.sqrt(a * b)
            acc_len[...] += jnp.sum(len_sq, axis=0)
            # TODO(synk): a pltpu.roll full-plane stencil (+ a single end-of-grid
            # border mask) would keep these shapes (8,128)-aligned and avoid the
            # cropped-slice copies; left as the exact-crop slice form because
            # this branch is statically dead for the default len_weight=0.

        # Single cross-lane (XLU) reduction per core, only on the final step.
        @pl.when(i == nsteps - 1)
        def _finish():
            len_sum = jnp.sum(acc_len[...]) if w_len else 0.0
            reg_sum = jnp.sum(acc_reg[...])
            area_sum = jnp.sum(acc_area[...]) if w_area else 0.0
            # Pack the per-core scalars into rows 0..2 of a lane-dense (8, 128)
            # plane -> one unmasked full-vreg store into this core's out block.
            row = jax.lax.broadcasted_iota(jnp.int32, (8, 128), 0)
            plane = jnp.where(row == 0, len_sum, 0.0)
            plane = jnp.where(row == 1, reg_sum, plane)
            plane = jnp.where(row == 2, area_sum, plane)
            out_ref[0] = plane

    return kernel


def _pick_tb(bc, h, w, in_itemsize, f32_temp_planes, budget_bytes):
    """Largest divisor of bc fitting the working-set budget, with >=4 steps.

    Working set per unit of TB = double-buffered inputs (2 arrays x 2 pipeline
    buffers, at the DMA dtype) + the f32 elementwise temporaries the body
    materializes (Mosaic does NOT treat shifted slices / intermediates as
    views), per the review feedback.
    """
    per_tb = h * w * (4 * in_itemsize + 4 * f32_temp_planes)
    tb = max(1, budget_bytes // per_tb)
    tb = min(tb, bc)
    if bc >= 4:
        # Keep at least ~4 grid steps so the auto-pipeline overlaps DMA/compute
        # (per-step overhead is only ~0.35 us; a single step hides nothing).
        tb = min(tb, bc // 4)
    tb = max(tb, 1)
    while bc % tb:
        tb -= 1
    return tb


def active_contour_loss(pred, target, *, area_weight=1e-6, len_weight=0.0,
                        w_area=False, cast_inputs_to_bf16=False):
    """Pallas implementation of ActiveContourLoss.forward (NCHW inputs).

    cast_inputs_to_bf16=True halves HBM traffic (the kernel is HBM-bound); the
    kernel always accumulates in f32.  Default False to keep the module's exact
    numerics.
    """
    B, C, H, W = pred.shape
    BC = B * C

    if cast_inputs_to_bf16:
        pred = pred.astype(jnp.bfloat16)
        target = target.astype(jnp.bfloat16)

    pred_f = pred.reshape(BC, H, W)
    target_f = target.reshape(BC, H, W)

    # Static specialization: hyperparameters are Python floats / bools.
    w_len = (len_weight != 0.0)

    itemsize = max(jnp.dtype(pred_f.dtype).itemsize,
                   jnp.dtype(target_f.dtype).itemsize)
    temp_planes = 18 if w_len else 8          # conservative f32-temporary count
    fixed_bytes = (3 * H * W + 8 * 128) * 4   # accumulator planes + out block
    budget = 16 * 1024 * 1024 - fixed_bytes   # target working set << vmem limit
    TB = _pick_tb(BC, H, W, itemsize, temp_planes, budget)

    total_steps = BC // TB
    # Leading "parallel" axis: splits work across the 2 TensorCores on v7x;
    # on v5e/v6e (1 TC) it simply runs serially with per-c accumulator resets.
    NC = 2 if (total_steps % 2 == 0 and total_steps >= 2) else 1
    steps = total_steps // NC

    def in_map(c, i):
        return (c * steps + i, 0, 0)

    scratch = [pltpu.VMEM((H, W), jnp.float32)]            # region accumulator
    if w_len:
        scratch.append(pltpu.VMEM((H - 2, W - 2), jnp.float32))
    if w_area:
        scratch.append(pltpu.VMEM((H, W), jnp.float32))

    partials = pl.pallas_call(
        _make_ac_kernel(w_len, w_area),
        out_shape=jax.ShapeDtypeStruct((NC, 8, 128), jnp.float32),
        grid_spec=pltpu.PrefetchScalarGridSpec(
            num_scalar_prefetch=0,
            grid=(NC, steps),
            in_specs=[
                pl.BlockSpec((TB, H, W), in_map),
                pl.BlockSpec((TB, H, W), in_map),
            ],
            out_specs=pl.BlockSpec((1, 8, 128), lambda c, i: (c, 0, 0)),
            scratch_shapes=scratch,
        ),
        compiler_params=pltpu.CompilerParams(
            dimension_semantics=("parallel", "arbitrary"),
            vmem_limit_bytes=32 * 1024 * 1024,
        ),
    )(pred_f, target_f)

    len_total = jnp.sum(partials[:, 0, 0])
    reg_total = jnp.sum(partials[:, 1, 0])
    area_total = jnp.sum(partials[:, 2, 0])

    loss = reg_total / (BC * H * W)
    if w_len:
        loss = loss + len_weight * (len_total / (BC * (H - 2) * (W - 2)))
    if w_area:
        loss = loss + area_weight * area_total
    return loss


def _ac_loss_ref(pred, target, area_weight=1e-6, len_weight=0.0, w_area=False):
    """Pure-JAX reference mirroring the PyTorch module."""
    eps = 1e-8
    dr = (pred[:, :, 1:, :] - pred[:, :, :-1, :])[:, :, 1:, :-2] ** 2
    dc = (pred[:, :, :, 1:] - pred[:, :, :, :-1])[:, :, :-2, 1:] ** 2
    delta_p = jnp.abs(dr + dc)
    drt = (target[:, :, 1:, :] - target[:, :, :-1, :])[:, :, 1:, :-2] ** 2
    dct = (target[:, :, :, 1:] - target[:, :, :, :-1])[:, :, :-2, 1:] ** 2
    delta_t = jnp.abs(drt + dct)
    length = jnp.mean((jnp.sqrt(delta_p + eps) - jnp.sqrt(delta_t + eps)) ** 2)
    region_in = jnp.mean(pred * (target - 1.0) ** 2)
    region_out = jnp.mean((1.0 - pred) * target ** 2)
    loss = len_weight * length + region_in + region_out
    if w_area:
        loss = loss + area_weight * jnp.sum(pred)
    return loss


if __name__ == "__main__":
    key = jax.random.PRNGKey(0)
    k1, k2 = jax.random.split(key)
    B, C, H, W = 2, 4, 16, 16

    # pred ~ probabilities, target ~ binary mask (same shapes as the module).
    pred = jax.nn.sigmoid(jax.random.normal(k1, (B, C, H, W), dtype=jnp.float32))
    target = (jax.random.uniform(k2, (B, C, H, W)) > 0.5).astype(jnp.float32)

    # Default hyperparameters (area_weight=1e-6, len_weight=0, w_area=False):
    # the length term is statically specialized away.
    loss = active_contour_loss(pred, target)
    jax.block_until_ready(loss)

    # Length and area branches enabled.
    loss_full = active_contour_loss(pred, target, len_weight=1.0, w_area=True)
    jax.block_until_ready(loss_full)

    # bf16 input DMA (halves HBM traffic; f32 accumulation inside the kernel).
    loss_bf16 = active_contour_loss(pred, target, len_weight=1.0, w_area=True,
                                    cast_inputs_to_bf16=True)
    jax.block_until_ready(loss_bf16)

    ref = _ac_loss_ref(pred, target)
    ref_full = _ac_loss_ref(pred, target, len_weight=1.0, w_area=True)

    assert abs(float(loss) - float(ref)) < 1e-5, (float(loss), float(ref))
    assert abs(float(loss_full) - float(ref_full)) < 1e-4, (
        float(loss_full), float(ref_full))
    assert abs(float(loss_bf16) - float(ref_full)) < 2e-2 * (1.0 + abs(float(ref_full))), (
        float(loss_bf16), float(ref_full))

    print("KERNEL_OK")
</pallas_src>

<mosaic_0001>
module attributes {stable_mosaic.version = 11 : i64} {
  func.func @kernel(%arg0: i32, %arg1: i32, %arg2: memref<2x16x16xf32, #tpu.memory_space<vmem>>, %arg3: memref<2x16x16xf32, #tpu.memory_space<vmem>>, %arg4: memref<1x8x128xf32, #tpu.memory_space<vmem>>, %arg5: memref<16x16xf32, #tpu.memory_space<vmem>>) attributes {dimension_semantics = [#tpu.dimension_semantics<parallel>, #tpu.dimension_semantics<arbitrary>], iteration_bounds = array<i64: 2, 2>, scalar_prefetch = 0 : i64, scratch_operands = 1 : i64, tpu.core_type = #tpu.core_type<tc>, window_params = [{transform_indices = @transform_0, window_bounds = array<i64: 2, 16, 16>}, {transform_indices = @transform_1, window_bounds = array<i64: 2, 16, 16>}, {transform_indices = @transform_2, window_bounds = array<i64: 1, 8, 128>}]} {
    %c0_i32 = arith.constant 0 : i32
    %0 = arith.cmpi eq, %arg1, %c0_i32 : i32
    %1 = arith.extui %0 : i1 to i32
    %c0_i32_0 = arith.constant 0 : i32
    %2 = arith.cmpi ne, %1, %c0_i32_0 : i32
    scf.if %2 {
      %cst_13 = arith.constant 0.000000e+00 : f32
      %19 = vector.broadcast %cst_13 : f32 to vector<16x16xf32>
      %c0_14 = arith.constant 0 : index
      %c0_15 = arith.constant 0 : index
      %20 = vector.load %arg5[%c0_14, %c0_15] : memref<16x16xf32, #tpu.memory_space<vmem>>, vector<16x16xf32>
      tpu.vector_store %arg5[%c0_14, %c0_15], %19 {strides = array<i32>} : memref<16x16xf32, #tpu.memory_space<vmem>>, vector<16x16xf32>,
    } else {
    }
    %c0 = arith.constant 0 : index
    %c0_1 = arith.constant 0 : index
    %c0_2 = arith.constant 0 : index
    %3 = vector.load %arg2[%c0, %c0_1, %c0_2] : memref<2x16x16xf32, #tpu.memory_space<vmem>>, vector<2x16x16xf32>
    %c0_3 = arith.constant 0 : index
    %c0_4 = arith.constant 0 : index
    %c0_5 = arith.constant 0 : index
    %4 = vector.load %arg3[%c0_3, %c0_4, %c0_5] : memref<2x16x16xf32, #tpu.memory_space<vmem>>, vector<2x16x16xf32>
    %5 = arith.mulf %4, %4 : vector<2x16x16xf32>
    %cst = arith.constant 2.000000e+00 : f32
    %6 = vector.broadcast %cst : f32 to vector<2x16x16xf32>
    %7 = arith.mulf %6, %4 : vector<2x16x16xf32>
    %cst_6 = arith.constant 1.000000e+00 : f32
    %8 = vector.broadcast %cst_6 : f32 to vector<2x16x16xf32>
    %9 = arith.subf %8, %7 : vector<2x16x16xf32>
    %10 = arith.mulf %3, %9 : vector<2x16x16xf32>
    %11 = arith.addf %5, %10 : vector<2x16x16xf32>
    %c0_7 = arith.constant 0 : index
    %c0_8 = arith.constant 0 : index
    %12 = vector.load %arg5[%c0_7, %c0_8] : memref<16x16xf32, #tpu.memory_space<vmem>>, vector<16x16xf32>
    %cst_9 = arith.constant dense<0.000000e+00> : vector<16x16xf32>
    %13 = vector.multi_reduction <add>, %11, %cst_9 [0] : vector<2x16x16xf32> to vector<16x16xf32>
    %14 = arith.addf %12, %13 : vector<16x16xf32>
    %c0_10 = arith.constant 0 : index
    %c0_11 = arith.constant 0 : index
    %15 = vector.load %arg5[%c0_10, %c0_11] : memref<16x16xf32, #tpu.memory_space<vmem>>, vector<16x16xf32>
    tpu.vector_store %arg5[%c0_10, %c0_11], %14 {strides = array<i32>} : memref<16x16xf32, #tpu.memory_space<vmem>>, vector<16x16xf32>,
    %c1_i32 = arith.constant 1 : i32
    %16 = arith.cmpi eq, %arg1, %c1_i32 : i32
    %17 = arith.extui %16 : i1 to i32
    %c0_i32_12 = arith.constant 0 : i32
    %18 = arith.cmpi ne, %17, %c0_i32_12 : i32
    scf.if %18 {
      %c0_13 = arith.constant 0 : index
      %c0_14 = arith.constant 0 : index
      %19 = vector.load %arg5[%c0_13, %c0_14] : memref<16x16xf32, #tpu.memory_space<vmem>>, vector<16x16xf32>
      %20 = vector.shape_cast %19 : vector<16x16xf32> to vector<1x16x16xf32>
      %cst_15 = arith.constant dense<0.000000e+00> : vector<1xf32>
      %21 = vector.multi_reduction <add>, %20, %cst_15 [1, 2] : vector<1x16x16xf32> to vector<1xf32>
      %22 = vector.shape_cast %21 : vector<1xf32> to vector<1x1x1xf32>
      %23 = vector.extract %22[0, 0, 0] : f32 from vector<1x1x1xf32>
      %24 = tpu.iota {dimensions = array<i32: 0>} : vector<8x128xi32>
      %c0_i32_16 = arith.constant 0 : i32
      %25 = vector.broadcast %c0_i32_16 : i32 to vector<8x128xi32>
      %26 = arith.cmpi eq, %24, %25 : vector<8x128xi32>
      %cst_17 = arith.constant 0.000000e+00 : f32
      %cst_18 = arith.constant 0.000000e+00 : f32
      %27 = vector.broadcast %cst_17 : f32 to vector<8x128xf32>
      %28 = vector.broadcast %cst_18 : f32 to vector<8x128xf32>
      %29 = arith.select %26, %27, %28 : vector<8x128xi1>, vector<8x128xf32>
      %c1_i32_19 = arith.constant 1 : i32
      %30 = vector.broadcast %c1_i32_19 : i32 to vector<8x128xi32>
      %31 = arith.cmpi eq, %24, %30 : vector<8x128xi32>
      %32 = vector.broadcast %23 : f32 to vector<8x128xf32>
      %33 = arith.select %31, %32, %29 : vector<8x128xi1>, vector<8x128xf32>
      %c2_i32 = arith.constant 2 : i32
      %34 = vector.broadcast %c2_i32 : i32 to vector<8x128xi32>
      %35 = arith.cmpi eq, %24, %34 : vector<8x128xi32>
      %cst_20 = arith.constant 0.000000e+00 : f32
      %36 = vector.broadcast %cst_20 : f32 to vector<8x128xf32>
      %37 = arith.select %35, %36, %33 : vector<8x128xi1>, vector<8x128xf32>
      %c0_21 = arith.constant 0 : index
      %c0_22 = arith.constant 0 : index
      %c0_23 = arith.constant 0 : index
      %38 = vector.load %arg4[%c0_21, %c0_22, %c0_23] : memref<1x8x128xf32, #tpu.memory_space<vmem>>, vector<1x8x128xf32>
      %39 = vector.shape_cast %38 : vector<1x8x128xf32> to vector<8x128xf32>
      %40 = vector.shape_cast %37 : vector<8x128xf32> to vector<1x8x128xf32>
      tpu.vector_store %arg4[%c0_21, %c0_22, %c0_23], %40 {strides = array<i32>} : memref<1x8x128xf32, #tpu.memory_space<vmem>>, vector<1x8x128xf32>,
    } else {
    }
    return
  }
  func.func @transform_0(%arg0: i32, %arg1: i32) -> (i32, i32, i32) {
    %c2_i32 = arith.constant 2 : i32
    %0 = arith.muli %arg0, %c2_i32 : i32
    %1 = arith.addi %0, %arg1 : i32
    %c0_i32 = arith.constant 0 : i32
    %c0_i32_0 = arith.constant 0 : i32
    %c0_i32_1 = arith.constant 0 : i32
    return %1, %c0_i32, %c0_i32_0 : i32, i32, i32
  }
  func.func @transform_1(%arg0: i32, %arg1: i32) -> (i32, i32, i32) {
    %c2_i32 = arith.constant 2 : i32
    %0 = arith.muli %arg0, %c2_i32 : i32
    %1 = arith.addi %0, %arg1 : i32
    %c0_i32 = arith.constant 0 : i32
    %c0_i32_0 = arith.constant 0 : i32
    %c0_i32_1 = arith.constant 0 : i32
    return %1, %c0_i32, %c0_i32_0 : i32, i32, i32
  }
  func.func @transform_2(%arg0: i32, %arg1: i32) -> (i32, i32, i32) {
    %c0_i32 = arith.constant 0 : i32
    %c0_i32_0 = arith.constant 0 : i32
    %c0_i32_1 = arith.constant 0 : i32
    return %arg0, %c0_i32, %c0_i32_0 : i32, i32, i32
  }
}

</mosaic_0001>

<bundles_post_ra>
// kernel: tpu_custom_call.1
= control target key start
LH: loop header
LB: loop body
LE: loop exit
PB: predicated region body
PF: predicated region fallthrough
CT: control target
= control target key end

     0   :  { %s1087_s0 = inlined_call_operand.hbm [shape: f32[8,16,16], index: 0, kind: input, shape index: {}]   ;;  %s1088_s1 = inlined_call_operand.hbm [shape: f32[8,16,16], index: 1, kind: input, shape index: {}]   ;;  %s1089_s2 = inlined_call_operand.hbm [shape: f32[2,8,128], index: 2, kind: output, shape index: {}]  }
   0x1   :  { %1098 = sst [smem:[#allocation16_spill]] %s1087_s0 }
   0x2   :  { %7 = vsyncpa [#allocation4], 0 }
   0x3   :  { %9 = vsyncpa [#allocation4 + $0x1], 0 }
   0x4   :  { %10 = vsyncpa [#allocation7], 0 }
   0x5   :  { %12 = vsyncpa [#allocation7 + $0x1], 0 }
   0x6   :  { %13 = vsyncpa [#allocation5], 0 }
   0x7   :  { %15 = vsyncpa [#allocation5 + $0x1], 0  ;;  %s783_s9 = smov 0   ;;  %s785_s10 = smov 0  }
   0x8   :  { %s787_s11 = smov 0   ;;  %s789_s12 = smov 0  }
   0x9   :  { %s791_s13 = smov 0   ;;  %s793_s14 = smov 0  }
   0xa   :  { %s795_s15 = smov 0   ;;  %s797_s16 = smov 0  }
   0xb   :  { %s799_s17 = smov 0   ;;  %s801_s18 = smov 0  }
   0xc   :  { %s803_s19 = smov 0  }
   0xd LB: > { %1099 = sst [smem:[#allocation12_spill]] %s752_s17  ;;  %s430_s20 = sadd.s32 4294967295, %s760_s19   ;;  %s760_s19 = sphi %s803_s19, %s21_s19   ;;  %s756_s18 = sphi %s801_s18, %s1119_s18   ;;  %s752_s17 = sphi %s799_s17, %s1118_s17   ;;  %s748_s16 = sphi %s797_s16, %s1117_s16   ;;  %s744_s15 = sphi %s795_s15, %s1116_s15   ;;  %s740_s14 = sphi %s793_s14, %s1125_s14   ;;  %s736_s13 = sphi %s791_s13, %s1124_s13   ;;  %s732_s12 = sphi %s789_s12, %s1123_s12   ;;  %s728_s11 = sphi %s787_s11, %s1122_s11   ;;  %s724_s10 = sphi %s785_s10, %s1121_s10   ;;  %s720_s9 = sphi %s783_s9, %s1120_s9  }
   0xe   : > { %1100 = sst [smem:[#allocation13_spill]] %s756_s18  ;;  %s431_s21 = sadd.s32 4294967294, %s760_s19  }
   0xf   : > { %s30_s22 = sadd.s32 1, %s752_s17  ;;  %s33_s23 = sadd.s32 1, %s756_s18 }
  0x10   : > { %p31_p0 = scmp.ge.s32.totalorder %s30_s22, 2  ;;  %s432_s24 = sshll.u32 %s756_s18, 1 }
  0x11   : > { %s842_s25 = sadd.s32 %s752_s17, %s432_s24  ;;  %s44_s26 = sadd.s32 1, %s740_s14 }
  0x12   : > { %s1127_s22 = smov (%p31_p0, %s30_s22), 0  ;;  %s1129_s23 = smov (!%p31_p0, %s33_s23), %s756_s18 }
  0x13   : > { %1101 = sst [smem:[#allocation14_spill]] %s1127_s22  ;;  %p51_p1 = scmp.ne.s32.totalorder %s740_s14, %s736_s13 }
  0x14   : > { %p52_p2 = scmp.eq.s32.totalorder %s760_s19, 0  ;;  %p35_p3 = scmp.ge.s32.totalorder %s1129_s23, 2 }
  0x15   : > { %p57_p4 = scmp.ne.s32.totalorder %s736_s13, %s732_s12  ;;  %p58_p6 = scmp.eq.s32.totalorder %s430_s20, 0 }
  0x16   : > { %p852_p5 = por %p52_p2, %p51_p1  ;;  %s1131_s23 = smov (%p35_p3, %s1129_s23), 0 }
  0x17   : > { %1103 = sst [smem:[#allocation15_spill]] %s1131_s23  ;;  %p858_p7 = por %p58_p6, %p57_p4 }
  0x18   : > { %s100_s29 = sadd.s32 1, %s728_s11  ;;  %s433_s30 = sshll.u32 %s1131_s23, 1 }
  0x19   : > { %s1104_s28 = scalar_select %p858_p7, 1, 0 }
  0x1a   : > { %s97_s3 = ssub.s32 %s756_s18, %s1131_s23  ;;  %s40_s4 = sadd.s32 %s433_s30, %s1127_s22 }
  0x1b   : > { %p98_p8 = scmp.eq.s32.totalorder %s97_s3, 0  ;;  %s41_s5 = ssub.s32 %s842_s25, %s40_s4 }
  0x1c   : > { %p110_p9 = scmp.ne.s32.totalorder %s728_s11, %s724_s10  ;;  %p42_p10 = scmp.eq.s32.totalorder %s41_s5, 0 }
  0x1d   : > { %p111_p11 = scmp.eq.s32.totalorder %s430_s20, 3  ;;  %p116_p13 = scmp.ne.s32.totalorder %s724_s10, %s720_s9 }
  0x1e   : > { %s871_s6 = scalar_select %p98_p8, %s728_s11, %s100_s29  }
  0x1f   : > { %s874_s7 = scalar_select %p42_p10, %s740_s14, %s44_s26  }
  0x20   : > { %p876_p12 = por %p111_p11, %p110_p9  ;;  %p117_p0 = scmp.eq.s32.totalorder %s431_s21, 3 }
  0x21   : > { %p481_p1 = scmp.lt.s32.totalorder %s760_s19, 4  ;;  %s886_s12 = sand.u32 1, %s740_s14  }
  0x22   : > { %s1105_s8 = scalar_select %p876_p12, 1, 0 }
  0x23   : > { %p888_p2 = por %p117_p0, %p116_p13  ;;  %s1091_s20 = sshll.u32 %s886_s12, 5 }
  0x24   : > { %s1092_s26 = sshll.u32 %s842_s25, 9  ;;  %s1107_s0 = sld [smem:[#allocation16_spill]] }
  0x25   : > { %s1106_s24 = scalar_select %p888_p2, 1, 0 }
  0x26   : > { %s141_s21 = scalar_lea.vmem [#allocation3], %s1091_s20  ;;  %p905_p3 = pnand %p481_p1, %p852_p5 }
  0x27   : > { %s151_s4 = sshll.u32 %s141_s21, 4  ;;  %s909_s4 = int_to_ptr.vmem [resolvable:$true] %s151_s4 }
  0x28   : > { %p576_p6 = pneg %p905_p3 }
  0x2a   : > { %s899_s3 = scalar_lea.hbm %s1107_s0, %s1092_s26  ;;  %s579_s27 = scalar_lea.hbm %s1107_s0, 2048 }
  0x2b   : > { %s574_s29 = scalar_lea.hbm %s899_s3, 512  ;;  %p580_p5 = scmp.lt.u32.totalorder %s899_s3, %s1107_s0 }
  0x2c   : > { %p575_p4 = scmp.ne.s32.totalorder %s899_s3, %s574_s29  ;;  %p581_p10 = scmp.lt.u32.totalorder %s579_s27, %s574_s29 }
  0x2d   : > { %p583_p13 = scmp.lt.u32.totalorder %s574_s29, %s899_s3 }
  0x2e   : > { %p577_p8 = pnand %p576_p6, %p575_p4  ;;  %p582_p11 = por %p581_p10, %p580_p5 }
  0x30   : > { %p578_p9 = pneg %p577_p8  ;;  %p584_p0 = por %p583_p13, %p582_p11 }
  0x32   : > { %p585_p1 = pnand %p584_p0, %p578_p9 }
  0x34   : > { %588 = shalt.err (!%p585_p1)
}
  0x35   : > { %s589_s23 = scalar_lea.vmem %s909_s4, 512  ;;  %s762_s30 = smov [#allocation3]  }
  0x36   : > { %p590_p4 = scmp.ne.s32.totalorder %s909_s4, %s589_s23  ;;  %s594_s21 = sshll.u32 %s762_s30, 4  ;;  %s595_s21 = int_to_ptr.vmem [resolvable:$false] %s594_s21 }
  0x37   : > { %s596_s20 = scalar_lea.vmem %s595_s21, 1024  ;;  %p597_p12 = scmp.lt.s32.totalorder %s909_s4, %s595_s21 }
  0x38   : > { %p592_p8 = pnand %p590_p4, %p576_p6  ;;  %p598_p5 = scmp.lt.s32.totalorder %s596_s20, %s589_s23 }
  0x3a   : > { %p593_p2 = pneg %p592_p8  ;;  %p599_p10 = por %p598_p5, %p597_p12 }
  0x3c   : > { %p600_p11 = pnand %p599_p10, %p593_p2 }
  0x3e   : > { %603 = shalt.err (!%p600_p11)
}
  0x3f   : > { %s763_s26 = smov 128   ;;  %s764_s29 = smov 8  }
  0x40   : > { %s1109_s23 = scalar_lea.sflag [#allocation4], %s886_s12  ;;  %p448_p12 = scmp.ge.s32.totalorder %s760_s19, 1 }
  0x41   : > { %473 = dma.hbm_to_vmem [thread:$0]  (!%p905_p3), %s899_s3, 512, %s909_s4, %s1109_s23, %s763_s26, %s763_s26, %s764_s29  }
  0x42   : > { %p183_p2 = scmp.lt.s32.totalorder %s760_s19, 5  ;;  %s1111_s30 = sshll.u32 %s842_s25, 9 }
  0x43   : > { %s953_s0 = scalar_lea.hbm %s1088_s1, %s1111_s30  ;;  %s1112_s22 = sshll.u32 %s886_s12, 5 }
  0x44   : > { %p944_p9 = pnand %p448_p12, %p183_p2  ;;  %s165_s18 = scalar_lea.vmem [#allocation6], %s1112_s22 }
  0x45   : > { %s175_s17 = sshll.u32 %s165_s18, 4  ;;  %s162_s3 = scalar_lea.sflag [#allocation7], %s886_s12  ;;  %s957_s17 = int_to_ptr.vmem [resolvable:$true] %s175_s17 }
  0x46   : > { %s604_s4 = scalar_lea.hbm %s953_s0, 512  ;;  %s609_s30 = scalar_lea.hbm %s1088_s1, 2048 }
  0x47   : > { %p605_p13 = scmp.ne.s32.totalorder %s953_s0, %s604_s4  ;;  %p610_p4 = scmp.lt.u32.totalorder %s953_s0, %s1088_s1 }
  0x48   : > { %p611_p8 = scmp.lt.u32.totalorder %s609_s30, %s604_s4  ;;  %p613_p10 = scmp.lt.u32.totalorder %s604_s4, %s953_s0 }
  0x49   : > { %p607_p0 = pnand %p605_p13, %p576_p6 }
  0x4a   : > { %p612_p5 = por %p611_p8, %p610_p4 }
  0x4b   : > { %p608_p1 = pneg %p607_p0 }
  0x4c   : > { %p614_p11 = por %p613_p10, %p612_p5 }
  0x4e   : > { %p615_p12 = pnand %p614_p11, %p608_p1 }
  0x50   : > { %618 = shalt.err (!%p615_p12)
}
  0x51   : > { %s619_s18 = scalar_lea.vmem %s957_s17, 512  ;;  %s765_s22 = smov [#allocation6]  }
  0x52   : > { %p620_p2 = scmp.ne.s32.totalorder %s957_s17, %s619_s18  ;;  %s624_s25 = sshll.u32 %s765_s22, 4  ;;  %s625_s25 = int_to_ptr.vmem [resolvable:$false] %s624_s25 }
  0x53   : > { %s626_s23 = scalar_lea.vmem %s625_s25, 1024  ;;  %p627_p7 = scmp.lt.s32.totalorder %s957_s17, %s625_s25 }
  0x54   : > { %p622_p13 = pnand %p620_p2, %p576_p6  ;;  %p628_p4 = scmp.lt.s32.totalorder %s626_s23, %s619_s18 }
  0x56   : > { %p623_p0 = pneg %p622_p13  ;;  %p629_p8 = por %p628_p4, %p627_p7 }
  0x58   : > { %p630_p5 = pnand %p629_p8, %p623_p0 }
  0x5a   : > { %633 = shalt.err (!%p630_p5)
}
  0x5b   : > { %476 = dma.hbm_to_vmem [thread:$0]  (!%p905_p3), %s953_s0, 512, %s957_s17, %s162_s3, %s763_s26, %s763_s26, %s764_s29  }
  0x5c   : > { %187 = sbr.rel (%p944_p9) target bundleno = 370 (0x172), region = 28  ;;  %s189_s4 = sand.u32 (!%p944_p9), 1, %s736_s13  }
  0x5d   : > { %s449_s30 = sshll.u32 (!%p944_p9), %s189_s4, 5  ;;  %s190_s21 = scalar_lea.sflag (!%p944_p9), [#allocation4], %s189_s4 }
  0x5e   : > { %s991_s20 = scalar_lea.vmem (!%p944_p9), [#allocation3], %s449_s30  ;;  %p1113_p7 = scmp.ne.s32.totalorder (!%p944_p9), %s1104_s28, 0 }
  0x63   : > { %707 = dma.done.wait (%p1113_p7), %s190_s21, 512  }
  0x64   : > { %709 = vsyncadd (%p1113_p7), %s190_s21, 4294966784  ;;  %s199_s12 = scalar_lea.sflag [#allocation7], %s189_s4  ;;  %s202_s5 = scalar_lea.vmem [#allocation6], %s449_s30 }
  0x65   : > { %711 = dma.done.wait (%p1113_p7), %s199_s12, 512  }
  0x66   : > { %713 = vsyncadd (%p1113_p7), %s199_s12, 4294966784  ;;  %s225_s0 = sand.u32 1, %s724_s10   ;;  %p452_p3 = scmp.ne.s32.totalorder %s744_s15, 0 }
  0x67   : > { %s1004_s17 = sshll.u32 %s225_s0, 3  ;;  %vm238_vm0 = vcmask (!%p452_p3), 130048   ;;  %v766_v0 = vmov (!%p452_p3), 0.0  }
  0x68   : > { %s227_s26 = scalar_lea.vmem [#allocation8], %s1004_s17  ;;  %237 = sbr.rel (%p452_p3) target bundleno = 111 (0x6f), region = 40  ;;  %239 = vst.msk [vmem:[#allocation2] sm:$0xff] (!%p452_p3), %vm238_vm0, %v766_v0  ;;  %240 = vst.msk [vmem:[#allocation2 + $0x8] sm:$0xff] (!%p452_p3), %vm238_vm0, %v766_v0 }
  0x6f PF: > { %v245_v1 = vld [vmem:[%s202_s5] sm:$0xff]  ;;  %v247_v2 = vld [vmem:[%s202_s5 + $0x10] sm:$0xff]  ;;  %v246_v6 = vld [vmem:[%s202_s5 + $0x8] sm:$0xff]  ;;  %vm271_vm1 = vcmask 130048   ;;  %p453_p6 = scmp.ne.s32.totalorder %s744_s15, 1 }
  0x70   : > { %v253_v3 = vmul.f32 2.0, %v245_v1  ;;  %v241_v4 = vld [vmem:[%s991_s20] sm:$0xff]  ;;  %v255_v5 = vmul.f32 2.0, %v247_v2  ;;  %v248_v7 = vld [vmem:[%s202_s5 + $0x18] sm:$0xff]  ;;  %v243_v8 = vld [vmem:[%s991_s20 + $0x10] sm:$0xff]  ;;  %v249_v9 = vmul.f32 %v245_v1, %v245_v1  ;;  %v254_v11 = vmul.f32 2.0, %v246_v6 }
  0x71   : > { %v251_v12 = vmul.f32 %v247_v2, %v247_v2  ;;  %v242_v14 = vld [vmem:[%s991_s20 + $0x8] sm:$0xff]  ;;  %v256_v15 = vmul.f32 2.0, %v248_v7  ;;  %v244_v17 = vld [vmem:[%s991_s20 + $0x18] sm:$0xff]  ;;  %v250_v18 = vmul.f32 %v246_v6, %v246_v6  ;;  %v252_v21 = vmul.f32 %v248_v7, %v248_v7  ;;  %v269_v29 = vld [vmem:[#allocation2] sm:$0xff] }
  0x72   : > { %v257_v10 = vsub.f32 1.0, %v253_v3  ;;  %v259_v13 = vsub.f32 1.0, %v255_v5  ;;  %v258_v19 = vsub.f32 1.0, %v254_v11  ;;  %v270_v34 = vld [vmem:[#allocation2 + $0x8] sm:$0xff]  ;;  %v300_v51 = vlaneseq (!%p453_p6) }
  0x73   : > { %v260_v22 = vsub.f32 1.0, %v256_v15 }
  0x74   : > { %v261_v16 = vmul.f32 %v257_v10, %v241_v4  ;;  %v263_v20 = vmul.f32 %v259_v13, %v243_v8  ;;  %v262_v24 = vmul.f32 %v258_v19, %v242_v14  ;;  %v301_v52 = vshrl.u32 (!%p453_p6), %v300_v51, 7 }
  0x75   : > { %v264_v26 = vmul.f32 %v260_v22, %v244_v17 }
  0x76   : > { %v265_v23 = vadd.f32 %v261_v16, %v249_v9  ;;  %v267_v25 = vadd.f32 %v263_v20, %v251_v12  ;;  %v266_v28 = vadd.f32 %v262_v24, %v250_v18  ;;  %vm302_vm2 = vcmp.eq.s32.totalorder (!%p453_p6), %v301_v52, 1 }
  0x77   : > { %v268_v31 = vadd.f32 %v264_v26, %v252_v21  ;;  %vm305_vm3 = vcmp.eq.s32.totalorder (!%p453_p6), %v301_v52, 2 }
  0x78   : > { %v272_v27 = vsel %vm271_vm1, %v265_v23, 0.0  ;;  %v273_v30 = vsel %vm271_vm1, %v267_v25, 0.0  ;;  %v275_v33 = vsel %vm271_vm1, %v266_v28, 0.0  ;;  %285 = sbr.rel (%p453_p6) target bundleno = 345 (0x159), region = 44 }
  0x79   : > { %v274_v32 = vadd.f32 %v273_v30, %v272_v27  ;;  %v276_v35 = vsel %vm271_vm1, %v268_v31, 0.0 }
  0x7a   : > { %v277_v37 = vadd.f32 %v276_v35, %v275_v33 }
  0x7b   : > { %v278_v36 = vadd.f32 %v274_v32, %v269_v29 }
  0x7c   : > { %v279_v38 = vadd.f32 %v277_v37, %v270_v34 }
  0x7d   : > { %280 = vst.msk [vmem:[#allocation2] sm:$0xff] %vm271_vm1, %v278_v36 }
  0x7e   : > { %281 = vst.msk [vmem:[#allocation2 + $0x8] sm:$0xff] %vm271_vm1, %v279_v38 }
  0x84   : > { %v286_v39 = vld [vmem:[#allocation2] sm:$0xff] }
  0x85   : > { %v287_v40 = vld [vmem:[#allocation2 + $0x8] sm:$0xff]  ;;  %v288_v41 = vsel %vm271_vm1, %v286_v39, 0.0 }
  0x86   : > { %v289_v42 = vsel %vm271_vm1, %v287_v40, 0.0 }
  0x87   : > { %v290_v43 = vadd.f32 %v289_v42, %v288_v41 }
  0x89   : > { %291 = vadd.xlane.f32.xlu0 %v290_v43 }
 0x116   : > { %v292_v44 = vpop.xlane.xlu0 %291 }
 0x117   : > { %v293_v45 = vrot.slane %v292_v44, 4 }
 0x119   : > { %v294_v46 = vadd.f32 %v293_v45, %v292_v44 }
 0x11b   : > { %v295_v47 = vrot.slane %v294_v46, 2 }
 0x11d   : > { %v296_v48 = vadd.f32 %v295_v47, %v294_v46 }
 0x11f   : > { %v297_v49 = vrot.slane %v296_v48, 1 }
 0x121   : > { %v298_v50 = vadd.f32 %v297_v49, %v296_v48 }
 0x123   : > { %462 = vpush %v298_v50 }
 0x154   : > { %s463_s15 = spop %462 }
 0x155   : > { %v303_v53 = vstv %s463_s15 }
 0x156   : > { %v304_v54 = vsel %vm302_vm2, %v303_v53, 0.0 }
 0x157   : > { %v306_v55 = vsel %vm305_vm3, 0.0, %v304_v54 }
 0x158   : > { %307 = vst [vmem:[%s227_s26] sm:$0xff] %v306_v55 }
 0x159 PF: > { %s455_s28 = sshll.u32 %s748_s16, 7  ;;  %s322_s18 = sshll.u32 %s227_s26, 4  ;;  %s323_s18 = int_to_ptr.vmem [resolvable:$true] %s322_s18 }
 0x15a   : > { %s1027_s3 = scalar_lea.hbm %s1089_s2, %s455_s28  ;;  %s309_s22 = scalar_lea.sflag [#allocation5], %s225_s0 }
 0x15b   : > { %s634_s25 = scalar_lea.vmem %s323_s18, 128  ;;  %p1114_p1 = scmp.ne.s32.totalorder %s1105_s8, 0 }
 0x15c   : > { %p635_p9 = scmp.ne.s32.totalorder %s323_s18, %s634_s25  ;;  %s767_s23 = smov [#allocation8]  }
 0x15d   : > { %s638_s4 = sshll.u32 %s767_s23, 4  ;;  %s639_s4 = int_to_ptr.vmem [resolvable:$false] %s638_s4 }
 0x15e   : > { %p636_p10 = pnand %p635_p9, %p1114_p1  ;;  %s640_s30 = scalar_lea.vmem %s639_s4, 256 }
 0x15f   : > { %p641_p12 = scmp.lt.s32.totalorder %s323_s18, %s639_s4  ;;  %p642_p2 = scmp.lt.s32.totalorder %s640_s30, %s634_s25 }
 0x160   : > { %p637_p11 = pneg %p636_p10 }
 0x161   : > { %p643_p13 = por %p642_p2, %p641_p12 }
 0x163   : > { %p644_p0 = pnand %p643_p13, %p637_p11 }
 0x165   : > { %647 = shalt.err (!%p644_p0)
}
 0x166   : > { %s648_s16 = scalar_lea.hbm %s1027_s3, 128  ;;  %s652_s12 = scalar_lea.hbm %s1089_s2, 256 }
 0x167   : > { %p649_p4 = scmp.ne.s32.totalorder %s1027_s3, %s648_s16  ;;  %p653_p7 = scmp.lt.u32.totalorder %s1027_s3, %s1089_s2 }
 0x168   : > { %p654_p3 = scmp.lt.u32.totalorder %s652_s12, %s648_s16  ;;  %p656_p9 = scmp.lt.u32.totalorder %s648_s16, %s1027_s3 }
 0x169   : > { %p650_p8 = pnand %p649_p4, %p1114_p1 }
 0x16a   : > { %p655_p6 = por %p654_p3, %p653_p7 }
 0x16b   : > { %p651_p5 = pneg %p650_p8 }
 0x16c   : > { %p657_p10 = por %p656_p9, %p655_p6 }
 0x16e   : > { %p658_p11 = pnand %p657_p10, %p651_p5 }
 0x170   : > { %661 = shalt.err (!%p658_p11)
}
 0x171   : > { %468 = dma.vmem_to_hbm [thread:$0]  (%p1114_p1), %s323_s18, 128, %s1027_s3, %s309_s22  }
 0x172 PF: > { %p482_p12 = scmp.ge.s32.totalorder %s760_s19, 2  ;;  %s334_s17 = sand.u32 1, %s720_s9  }
 0x173   : > { %p1115_p2 = scmp.ne.s32.totalorder %s1106_s24, 0  ;;  %s335_s26 = scalar_lea.sflag [#allocation5], %s334_s17 }
 0x175   : > { %p478_p13 = pnand %p482_p12, %p1115_p2 }
 0x177   : > { %715 = dma.done.wait (!%p478_p13), %s335_s26, 128  }
 0x178   : > { %717 = vsyncadd (!%p478_p13), %s335_s26, 4294967168  ;;  %s21_s19 = sadd.s32 1, %s760_s19   ;;  %s1116_s15 = sld [smem:[#allocation12_spill]] }
 0x179   : > { %p18_p0 = scmp.ge.s32.totalorder %s21_s19, 6   ;;  %s1117_s16 = sld [smem:[#allocation13_spill]] }
 0x17a   : > { %s1118_s17 = sld [smem:[#allocation14_spill]]  ;;  %s1119_s18 = sld [smem:[#allocation15_spill]] }
 0x17b   : > { %s1120_s9 = smov %s724_s10  ;;  %s1121_s10 = smov %s728_s11 }
 0x17c   : > { %s1122_s11 = smov %s871_s6  ;;  %s1123_s12 = smov %s736_s13 }
 0x17d   : > { %s1124_s13 = smov %s740_s14  ;;  %s1125_s14 = smov %s874_s7 }
 0x17e   :  { %20 = sbr.rel (!%p18_p0) target bundleno = 13 (0xd), region = 94 }
 0x185   :  { %340 = vsyncpa [#allocation4], 1 }
 0x186   :  { %342 = vsyncpa [#allocation4 + $0x1], 1 }
 0x187   :  { %343 = vsyncpa [#allocation7], 1 }
 0x188   :  { %345 = vsyncpa [#allocation7 + $0x1], 1 }
 0x189   :  { %346 = vsyncpa [#allocation5], 1 }
 0x18a   :  { %348 = vsyncpa [#allocation5 + $0x1], 1 }

</bundles_post_ra>
